<compile_context>
chip_gen: v5e
topology: v5e:2x2
jax: 0.10.0
libtpu: 0.0.40
codegen_flags: <defaults>
</compile_context>

<pallas_src>
import functools

import jax
import jax.numpy as jnp
from jax.experimental import pallas as pl
from jax.experimental.pallas import tpu as pltpu

_LANE = 128


def _mlp_kernel(x_ref, *refs, num_layers):
    """Computes the whole MLP for one batch tile (batch on the lane axis).

    x_ref : (F0, TM)   activations, batch on lanes
    refs  : (W1, b1, W2, b2, ..., WL, bL, out_ref)
            Wi : (F_out, F_in)  (PyTorch nn.Linear layout)
            bi : (F_out, 1)
    """
    out_ref = refs[-1]
    param_refs = refs[:-1]

    h = x_ref[...].astype(jnp.float32)  # (F_in, TM)
    for layer in range(num_layers):
        w = param_refs[2 * layer][...]       # (F_out, F_in)
        b = param_refs[2 * layer + 1][...]   # (F_out, 1)
        f_in = w.shape[1]
        if f_in <= 4:
            # Tiny contraction (first layer has F_in == 2): keep it on the VPU
            # as broadcast FMAs instead of a K=2 MXU matmul.
            acc = w[:, 0:1] * h[0:1, :]
            for k in range(1, f_in):
                acc = acc + w[:, k:k + 1] * h[k:k + 1, :]
            h = acc + b
        else:
            h = jnp.dot(w, h, preferred_element_type=jnp.float32) + b
        if layer != num_layers - 1:
            # sigmoid(h) = 1 / (1 + exp(-h)): exp on the EUP, approx reciprocal
            # also on the EUP slot -> keeps the VPU / load-store slots free.
            e = jnp.exp(-h)
            h = pl.reciprocal(1.0 + e, approx=True)
    out_ref[...] = h.astype(out_ref.dtype)


def integrated_brdf_forward(x, weights, biases, *, tile_m=8192):
    """IntegratedBrdfNetwork forward pass as a Pallas TPU kernel.

    x:       (N, F0) float32
    weights: list of (F_out, F_in) float32 arrays  (PyTorch nn.Linear layout)
    biases:  list of (F_out, 1) float32 arrays
    returns: (N,) float32  (matches PyTorch .squeeze(1) when F_last == 1)
    """
    n, f0 = x.shape
    num_layers = len(weights)
    f_last = weights[-1].shape[0]

    # Batch lives on the lane axis -> tiles must be multiples of 128.
    tile_m = max(_LANE, (tile_m // _LANE) * _LANE)
    if n <= tile_m:
        # Small batch: single grid step, pad up to a lane multiple.
        tile = ((n + _LANE - 1) // _LANE) * _LANE
    else:
        tile = tile_m
    n_pad = pl.cdiv(n, tile) * tile
    grid = (n_pad // tile,)

    # Transpose to lane-dense layout and pad the batch (padded cols cropped below).
    xt = x.T.astype(jnp.float32)                 # (F0, N)
    if n_pad != n:
        xt = jnp.pad(xt, ((0, 0), (0, n_pad - n)))

    in_specs = [pl.BlockSpec((f0, tile), lambda i: (0, i))]
    flat_params = []
    for w, b in zip(weights, biases):
        # Constant-index -> weights/biases stay VMEM-resident across the grid.
        in_specs.append(pl.BlockSpec(w.shape, lambda i: (0, 0)))
        in_specs.append(pl.BlockSpec(b.shape, lambda i: (0, 0)))
        flat_params.extend([w, b])

    out_spec = pl.BlockSpec((f_last, tile), lambda i: (0, i))

    kernel = functools.partial(_mlp_kernel, num_layers=num_layers)

    y = pl.pallas_call(
        kernel,
        out_shape=jax.ShapeDtypeStruct((f_last, n_pad), jnp.float32),
        grid_spec=pltpu.PrefetchScalarGridSpec(
            num_scalar_prefetch=0,
            grid=grid,
            in_specs=in_specs,
            out_specs=out_spec,
        ),
        compiler_params=pltpu.CompilerParams(
            dimension_semantics=("parallel",),
        ),
    )(xt, *flat_params)

    y = y[:, :n]                      # drop padded batch columns
    if f_last == 1:
        return y[0]                   # (N,)  == nn.Sequential(...).squeeze(1)
    return y.T


def init_params(key, num_features):
    """Deterministic parameter init (PyTorch-Linear-style uniform bounds).

    Weights in PyTorch layout (F_out, F_in); biases as (F_out, 1).
    """
    weights, biases = [], []
    for i in range(len(num_features) - 1):
        f_in, f_out = num_features[i], num_features[i + 1]
        key, kw, kb = jax.random.split(key, 3)
        bound = 1.0 / (f_in ** 0.5)
        w = jax.random.uniform(kw, (f_out, f_in), jnp.float32, -bound, bound)
        b = jax.random.uniform(kb, (f_out, 1), jnp.float32, -bound, bound)
        weights.append(w)
        biases.append(b)
    return weights, biases


def reference_forward(x, weights, biases):
    h = x
    num_layers = len(weights)
    for i, (w, b) in enumerate(zip(weights, biases)):
        h = h @ w.T + b[:, 0]
        if i != num_layers - 1:
            h = jax.nn.sigmoid(h)
    return h[:, 0] if h.shape[1] == 1 else h


if __name__ == "__main__":
    # Typical integrated-BRDF fitting config: 2 inputs (n_dot_v, glossiness),
    # two hidden layers, scalar output.
    num_features = [2, 32, 32, 1]
    batch = 128

    key = jax.random.PRNGKey(0)
    key, kx = jax.random.split(key)
    x = jax.random.uniform(kx, (batch, num_features[0]), jnp.float32)

    weights, biases = init_params(key, num_features)

    out = integrated_brdf_forward(x, weights, biases)
    out = jax.block_until_ready(out)

    ref = reference_forward(x, weights, biases)
    assert out.shape == (batch,), out.shape
    # approx reciprocal in the in-kernel sigmoid -> slightly looser tolerance.
    assert jnp.allclose(out, ref, atol=2e-3, rtol=2e-3), (
        float(jnp.max(jnp.abs(out - ref)))
    )
    print("KERNEL_OK")
</pallas_src>

<mosaic_0001>
module attributes {stable_mosaic.version = 11 : i64} {
  func.func @_mlp_kernel(%arg0: i32, %arg1: memref<2x128xf32, #tpu.memory_space<vmem>>, %arg2: memref<32x2xf32, #tpu.memory_space<vmem>>, %arg3: memref<32x1xf32, #tpu.memory_space<vmem>>, %arg4: memref<32x32xf32, #tpu.memory_space<vmem>>, %arg5: memref<32x1xf32, #tpu.memory_space<vmem>>, %arg6: memref<1x32xf32, #tpu.memory_space<vmem>>, %arg7: memref<1x1xf32, #tpu.memory_space<vmem>>, %arg8: memref<1x128xf32, #tpu.memory_space<vmem>>) attributes {dimension_semantics = [#tpu.dimension_semantics<parallel>], iteration_bounds = array<i64: 1>, scalar_prefetch = 0 : i64, scratch_operands = 0 : i64, tpu.core_type = #tpu.core_type<tc>, window_params = [{transform_indices = @transform_0, window_bounds = array<i64: 2, 128>}, {pipeline_mode = #tpu.pipeline_mode<synchronous>, transform_indices = @transform_1, window_bounds = array<i64: 32, 2>}, {pipeline_mode = #tpu.pipeline_mode<synchronous>, transform_indices = @transform_2, window_bounds = array<i64: 32, 1>}, {pipeline_mode = #tpu.pipeline_mode<synchronous>, transform_indices = @transform_3, window_bounds = array<i64: 32, 32>}, {pipeline_mode = #tpu.pipeline_mode<synchronous>, transform_indices = @transform_4, window_bounds = array<i64: 32, 1>}, {pipeline_mode = #tpu.pipeline_mode<synchronous>, transform_indices = @transform_5, window_bounds = array<i64: 1, 32>}, {pipeline_mode = #tpu.pipeline_mode<synchronous>, transform_indices = @transform_6, window_bounds = array<i64: 1, 1>}, {transform_indices = @transform_7, window_bounds = array<i64: 1, 128>}]} {
    %c0 = arith.constant 0 : index
    %c0_0 = arith.constant 0 : index
    %0 = vector.load %arg1[%c0, %c0_0] : memref<2x128xf32, #tpu.memory_space<vmem>>, vector<2x128xf32>
    %c0_1 = arith.constant 0 : index
    %c0_2 = arith.constant 0 : index
    %1 = vector.load %arg2[%c0_1, %c0_2] : memref<32x2xf32, #tpu.memory_space<vmem>>, vector<32x2xf32>
    %c0_3 = arith.constant 0 : index
    %c0_4 = arith.constant 0 : index
    %2 = vector.load %arg3[%c0_3, %c0_4] : memref<32x1xf32, #tpu.memory_space<vmem>>, vector<32x1xf32>
    %3 = vector.extract_strided_slice %1 {offsets = [0, 0], sizes = [32, 1], strides = [1, 1]} : vector<32x2xf32> to vector<32x1xf32>
    %4 = vector.extract_strided_slice %0 {offsets = [0, 0], sizes = [1, 128], strides = [1, 1]} : vector<2x128xf32> to vector<1x128xf32>
    %5 = vector.broadcast %3 : vector<32x1xf32> to vector<32x128xf32>
    %6 = vector.broadcast %4 : vector<1x128xf32> to vector<32x128xf32>
    %7 = arith.mulf %5, %6 : vector<32x128xf32>
    %8 = vector.extract_strided_slice %1 {offsets = [0, 1], sizes = [32, 1], strides = [1, 1]} : vector<32x2xf32> to vector<32x1xf32>
    %9 = vector.extract_strided_slice %0 {offsets = [1, 0], sizes = [1, 128], strides = [1, 1]} : vector<2x128xf32> to vector<1x128xf32>
    %10 = vector.broadcast %8 : vector<32x1xf32> to vector<32x128xf32>
    %11 = vector.broadcast %9 : vector<1x128xf32> to vector<32x128xf32>
    %12 = arith.mulf %10, %11 : vector<32x128xf32>
    %13 = arith.addf %7, %12 : vector<32x128xf32>
    %14 = vector.broadcast %2 : vector<32x1xf32> to vector<32x128xf32>
    %15 = arith.addf %13, %14 : vector<32x128xf32>
    %cst = arith.constant 0.000000e+00 : f32
    %16 = vector.broadcast %cst : f32 to vector<32x128xf32>
    %17 = arith.subf %16, %15 : vector<32x128xf32>
    %18 = math.exp %17 : vector<32x128xf32>
    %cst_5 = arith.constant 1.000000e+00 : f32
    %19 = vector.broadcast %cst_5 : f32 to vector<32x128xf32>
    %20 = arith.addf %19, %18 : vector<32x128xf32>
    %21 = tpu.reciprocal %20 {approx = true} : vector<32x128xf32> -> vector<32x128xf32>
    %c0_6 = arith.constant 0 : index
    %c0_7 = arith.constant 0 : index
    %22 = vector.load %arg4[%c0_6, %c0_7] : memref<32x32xf32, #tpu.memory_space<vmem>>, vector<32x32xf32>
    %c0_8 = arith.constant 0 : index
    %c0_9 = arith.constant 0 : index
    %23 = vector.load %arg5[%c0_8, %c0_9] : memref<32x1xf32, #tpu.memory_space<vmem>>, vector<32x1xf32>
    %cst_10 = arith.constant dense<0.000000e+00> : vector<32x128xf32>
    %24 = tpu.matmul %22, %21, %cst_10 {dimension_numbers = #tpu.dot_dimension_numbers<[1], [0], [0], [1], [0, 0, 1, 1], [], []>} : vector<32x32xf32>, vector<32x128xf32>, vector<32x128xf32> -> vector<32x128xf32>
    %25 = vector.broadcast %23 : vector<32x1xf32> to vector<32x128xf32>
    %26 = arith.addf %24, %25 : vector<32x128xf32>
    %cst_11 = arith.constant 0.000000e+00 : f32
    %27 = vector.broadcast %cst_11 : f32 to vector<32x128xf32>
    %28 = arith.subf %27, %26 : vector<32x128xf32>
    %29 = math.exp %28 : vector<32x128xf32>
    %cst_12 = arith.constant 1.000000e+00 : f32
    %30 = vector.broadcast %cst_12 : f32 to vector<32x128xf32>
    %31 = arith.addf %30, %29 : vector<32x128xf32>
    %32 = tpu.reciprocal %31 {approx = true} : vector<32x128xf32> -> vector<32x128xf32>
    %c0_13 = arith.constant 0 : index
    %c0_14 = arith.constant 0 : index
    %33 = vector.load %arg6[%c0_13, %c0_14] : memref<1x32xf32, #tpu.memory_space<vmem>>, vector<1x32xf32>
    %c0_15 = arith.constant 0 : index
    %c0_16 = arith.constant 0 : index
    %34 = vector.load %arg7[%c0_15, %c0_16] : memref<1x1xf32, #tpu.memory_space<vmem>>, vector<1x1xf32>
    %cst_17 = arith.constant dense<0.000000e+00> : vector<1x128xf32>
    %35 = tpu.matmul %33, %32, %cst_17 {dimension_numbers = #tpu.dot_dimension_numbers<[1], [0], [0], [1], [0, 0, 1, 1], [], []>} : vector<1x32xf32>, vector<32x128xf32>, vector<1x128xf32> -> vector<1x128xf32>
    %36 = vector.broadcast %34 : vector<1x1xf32> to vector<1x128xf32>
    %37 = arith.addf %35, %36 : vector<1x128xf32>
    %c0_18 = arith.constant 0 : index
    %c0_19 = arith.constant 0 : index
    %38 = vector.load %arg8[%c0_18, %c0_19] : memref<1x128xf32, #tpu.memory_space<vmem>>, vector<1x128xf32>
    tpu.vector_store %arg8[%c0_18, %c0_19], %37 {strides = array<i32>} : memref<1x128xf32, #tpu.memory_space<vmem>>, vector<1x128xf32>,
    return
  }
  func.func @transform_0(%arg0: i32) -> (i32, i32) {
    %c0_i32 = arith.constant 0 : i32
    %c0_i32_0 = arith.constant 0 : i32
    return %c0_i32, %arg0 : i32, i32
  }
  func.func @transform_1(%arg0: i32) -> (i32, i32) {
    %c0_i32 = arith.constant 0 : i32
    %c0_i32_0 = arith.constant 0 : i32
    %c0_i32_1 = arith.constant 0 : i32
    return %c0_i32, %c0_i32_0 : i32, i32
  }
  func.func @transform_2(%arg0: i32) -> (i32, i32) {
    %c0_i32 = arith.constant 0 : i32
    %c0_i32_0 = arith.constant 0 : i32
    %c0_i32_1 = arith.constant 0 : i32
    return %c0_i32, %c0_i32_0 : i32, i32
  }
  func.func @transform_3(%arg0: i32) -> (i32, i32) {
    %c0_i32 = arith.constant 0 : i32
    %c0_i32_0 = arith.constant 0 : i32
    %c0_i32_1 = arith.constant 0 : i32
    return %c0_i32, %c0_i32_0 : i32, i32
  }
  func.func @transform_4(%arg0: i32) -> (i32, i32) {
    %c0_i32 = arith.constant 0 : i32
    %c0_i32_0 = arith.constant 0 : i32
    %c0_i32_1 = arith.constant 0 : i32
    return %c0_i32, %c0_i32_0 : i32, i32
  }
  func.func @transform_5(%arg0: i32) -> (i32, i32) {
    %c0_i32 = arith.constant 0 : i32
    %c0_i32_0 = arith.constant 0 : i32
    %c0_i32_1 = arith.constant 0 : i32
    return %c0_i32, %c0_i32_0 : i32, i32
  }
  func.func @transform_6(%arg0: i32) -> (i32, i32) {
    %c0_i32 = arith.constant 0 : i32
    %c0_i32_0 = arith.constant 0 : i32
    %c0_i32_1 = arith.constant 0 : i32
    return %c0_i32, %c0_i32_0 : i32, i32
  }
  func.func @transform_7(%arg0: i32) -> (i32, i32) {
    %c0_i32 = arith.constant 0 : i32
    %c0_i32_0 = arith.constant 0 : i32
    return %c0_i32, %arg0 : i32, i32
  }
}

</mosaic_0001>

<bundles_post_ra>
// kernel: tpu_custom_call.1
= control target key start
LH: loop header
LB: loop body
LE: loop exit
PB: predicated region body
PF: predicated region fallthrough
CT: control target
= control target key end

     0   :  { %s461_s0 = inlined_call_operand.vmem [shape: f32[2,128], index: 0, kind: input, shape index: {}]   ;;  %s462_s1 = inlined_call_operand.vmem [shape: f32[32,2], index: 1, kind: input, shape index: {}]   ;;  %s463_s2 = inlined_call_operand.vmem [shape: f32[32,1], index: 2, kind: input, shape index: {}]   ;;  %s464_s3 = inlined_call_operand.vmem [shape: f32[32,32], index: 3, kind: input, shape index: {}]   ;;  %s465_s4 = inlined_call_operand.vmem [shape: f32[32,1], index: 4, kind: input, shape index: {}]   ;;  %s466_s5 = inlined_call_operand.vmem [shape: f32[1,32], index: 5, kind: input, shape index: {}]   ;;  %s467_s6 = inlined_call_operand.<no memory space> [shape: f32[1,1], index: 6, kind: input, shape index: {}]   ;;  %s468_s7 = inlined_call_operand.hbm [shape: f32[1,128], index: 7, kind: output, shape index: {}]  }
   0x1   :  { %v12_v0 = vstv %s467_s6 }
   0x2   :  { %13 = vst [vmem:[#allocation2] sm:$0x1] %v12_v0 }
   0x3   :  { %v33_v1 = vld [vmem:[%s462_s1 + $0x18] sm:$0xff]  ;;  %v32_v2 = vld [vmem:[%s462_s1 + $0x10] sm:$0xff]  ;;  %v353_v3 = vmov 0   ;;  %v31_v4 = vld [vmem:[%s462_s1 + $0x8] sm:$0xff] }
   0x4   :  { %288 = vset.pattern.permute.xlu1 %v353_v3  ;;  %286 = vset.pattern.permute.xlu0 %v353_v3 }
   0x5   :  { %55 = vperm.xlu0 %286, %v33_v1   ;;  %50 = vperm.xlu1 %288, %v32_v2  }
   0x6   :  { %290 = vset.pattern.permute.xlu2 %v353_v3 }
   0x7   :  { %14 = vsyncpa [#allocation4], 0  ;;  %45 = vperm.xlu2 %290, %v31_v4   ;;  %v354_v5 = vmov 1   ;;  %v30_v6 = vld [vmem:[%s462_s1] sm:$0xff]  ;;  %v37_v7 = vld [vmem:[%s463_s2 + $0x18] sm:$0xff]  ;;  %vm160_vm0 = vcmask 261120  }
   0x8   :  { %v36_v8 = vld [vmem:[%s463_s2 + $0x10] sm:$0xff]  ;;  %v34_v9 = vld [vmem:[%s463_s2] sm:$0xff]  ;;  %v35_v10 = vld [vmem:[%s463_s2 + $0x8] sm:$0xff]  ;;  %s355_s9 = smov [#allocation3]   ;;  %s261_s13 = sshll.u32 %s468_s7, 4  ;;  %s262_s13 = int_to_ptr.hbm [resolvable:$true] %s261_s13 }
   0x9   :  { %v139_v11 = vld [vmem:[%s465_s4 + $0x18] sm:$0xff]  ;;  %v223_v12 = vld [vmem:[#allocation2] sm:$0x1]  ;;  %v138_v13 = vld [vmem:[%s465_s4 + $0x10] sm:$0xff]  ;;  %s259_s10 = sshll.u32 %s355_s9, 4  ;;  %s260_s10 = int_to_ptr.vmem [resolvable:$true] %s259_s10 }
   0xa   :  { %v137_v14 = vld [vmem:[%s465_s4 + $0x8] sm:$0xff]  ;;  %v136_v15 = vld [vmem:[%s465_s4] sm:$0xff] }
   0xb   :  { %v29_v20 = vld [vmem:[%s461_s0] sm:$0x3] }
   0xc   :  { %v79_v21 = vperm.slane %v29_v20, 1  ;;  %v58_v23 = vperm.slane %v29_v20, 0 }
   0xd   :  { %287 = vset.pattern.permute.xlu0 %v354_v5  ;;  %289 = vset.pattern.permute.xlu1 %v354_v5 }
   0xe   :  { %76 = vperm.xlu0 %287, %v33_v1   ;;  %72 = vperm.xlu1 %289, %v32_v2   ;;  %v132_v2 = vld [vmem:[%s464_s3] sm:$0xff] }
   0xf   :  { %291 = vset.pattern.permute.xlu2 %v354_v5  ;;  %v134_v5 = vld [vmem:[%s464_s3 + $0x10] sm:$0xff] }
  0x10   :  { %68 = vperm.xlu2 %291, %v31_v4   ;;  %v133_v4 = vld [vmem:[%s464_s3 + $0x8] sm:$0xff] }
  0x16   :  { %292 = vset.pattern.permute.xlu1 %v353_v3  ;;  %64 = vperm.xlu0 %287, %v30_v6  }
  0x17   :  { %105 = vperm.xlu1 %292, %v37_v7  }
  0x18   :  { %293 = vset.pattern.permute.xlu2 %v353_v3 }
  0x19   :  { %40 = vperm.xlu2 %293, %v30_v6   ;;  %v135_v6 = vld [vmem:[%s464_s3 + $0x18] sm:$0xff] }
  0x1e   :  { %294 = vset.pattern.permute.xlu0 %v353_v3 }
  0x1f   :  { %100 = vperm.xlu1 %292, %v36_v8   ;;  %90 = vperm.xlu0 %294, %v34_v9  }
  0x21   :  { %95 = vperm.xlu2 %293, %v35_v10  }
  0x27   :  { %157 = vperm.xlu1 %292, %v139_v11   ;;  %226 = vperm.xlu0 %294, %v223_v12  }
  0x29   :  { %152 = vperm.xlu2 %293, %v138_v13  }
  0x2f   :  { %147 = vperm.xlu1 %292, %v137_v14  }
  0x31   :  { %142 = vperm.xlu2 %293, %v136_v15  }
  0x61   :  { %v46_v16 = vpop.permute.xlu2 %45 }
  0x62   :  { %v60_v26 = vmul.f32 %v58_v23, %v46_v16 }
  0x6a   :  { %v69_v17 = vpop.permute.xlu2 %68 }
  0x6b   :  { %v81_v27 = vmul.f32 %v79_v21, %v69_v17 }
  0x6d   :  { %v85_v30 = vadd.f32 %v81_v27, %v60_v26 }
  0x73   :  { %v41_v22 = vpop.permute.xlu2 %40 }
  0x74   :  { %v59_v37 = vmul.f32 %v58_v23, %v41_v22 }
  0x77   :  { %v51_v18 = vpop.permute.xlu1 %50  ;;  %v56_v19 = vpop.permute.xlu0 %55 }
  0x78   :  { %v62_v29 = vmul.f32 %v58_v23, %v56_v19  ;;  %v61_v41 = vmul.f32 %v58_v23, %v51_v18 }
  0x7b   :  { %v96_v33 = vpop.permute.xlu2 %95 }
  0x7c   :  { %v109_v35 = vadd.f32 %v96_v33, %v85_v30 }
  0x7e   :  { %v113_v42 = vsub.f32 0.0, %v109_v35 }
  0x80   :  { %v77_v24 = vpop.permute.xlu0 %76  ;;  %v73_v25 = vpop.permute.xlu1 %72  ;;  %v118_v48 = vmul.f32 1.442695, %v113_v42 }
  0x81   :  { %v83_v28 = vmul.f32 %v79_v21, %v77_v24  ;;  %v82_v38 = vmul.f32 %v79_v21, %v73_v25 }
  0x83   :  { %v87_v32 = vadd.f32 %v83_v28, %v62_v29  ;;  %v86_v44 = vadd.f32 %v82_v38, %v61_v41  ;;  %v153_v8 = vpop.permute.xlu2 %152  ;;  %v222_v38 = vld [vmem:[%s466_s5] sm:$0x1] }
  0x88   :  { %v65_v31 = vpop.permute.xlu0 %64 }
  0x89   :  { %v106_v34 = vpop.permute.xlu1 %105  ;;  %v80_v39 = vmul.f32 %v79_v21, %v65_v31 }
  0x8a   :  { %v111_v36 = vadd.f32 %v106_v34, %v87_v32 }
  0x8b   :  { %v84_v45 = vadd.f32 %v80_v39, %v59_v37  ;;  %v143_v15 = vpop.permute.xlu2 %142 }
  0x8c   :  { %v115_v40 = vsub.f32 0.0, %v111_v36 }
  0x8e   :  { %v122_v43 = vmul.f32 1.442695, %v115_v40 }
  0x90   :  { %295 = vpow2.f32 %v122_v43 }
  0x91   :  { %v101_v46 = vpop.permute.xlu1 %100  ;;  %v91_v47 = vpop.permute.xlu0 %90  ;;  %297 = vpow2.f32 %v118_v48 }
  0x92   :  { %v110_v49 = vadd.f32 %v101_v46, %v86_v44  ;;  %v108_v50 = vadd.f32 %v91_v47, %v84_v45 }
  0x94   :  { %v114_v51 = vsub.f32 0.0, %v110_v49  ;;  %v112_v52 = vsub.f32 0.0, %v108_v50 }
  0x96   :  { %v296_v53 = vpop.eup %295  ;;  %v120_v54 = vmul.f32 1.442695, %v114_v51  ;;  %v116_v55 = vmul.f32 1.442695, %v112_v52 }
  0x97   :  { %v127_v56 = vadd.f32 1.0, %v296_v53  ;;  %v298_v57 = vpop.eup %297 }
  0x98   :  { %299 = vpow2.f32 %v120_v54  ;;  %v125_v60 = vadd.f32 1.0, %v298_v57 }
  0x99   :  { %301 = vrcp.f32 %v127_v56  ;;  %v158_v7 = vpop.permute.xlu1 %157  ;;  %v227_v40 = vpop.permute.xlu0 %226 }
  0x9a   :  { %303 = vpow2.f32 %v116_v55  ;;  %v229_v41 = vperm.slane %v227_v40, 0 }
  0x9e   :  { %v300_v58 = vpop.eup %299 }
  0x9f   :  { %v302_v59 = vpop.eup %301  ;;  %v126_v61 = vadd.f32 1.0, %v300_v58 }
  0xa0   :  { %v304_v62 = vpop.eup %303  ;;  %185 = vmatpush.msra.mxu0 %v302_v59  ;;  %275 = vmatpush.msra.mxu2 %v302_v59 }
  0xa1   :  { %305 = vrcp.f32 %v126_v61  ;;  %v124_v63 = vadd.f32 1.0, %v304_v62  ;;  %276 = vmatpush.msra.mxu3 %v302_v59  ;;  %v148_v11 = vpop.permute.xlu1 %147 }
  0xa2   :  { %307 = vrcp.f32 %v125_v60 }
  0xa3   :  { %309 = vrcp.f32 %v124_v63 }
  0xa7   :  { %v306_v0 = vpop.eup %305 }
  0xa8   :  { %186 = vmatpush.msra.mxu0 %v306_v0  ;;  %277 = vmatpush.msra.mxu2 %v306_v0  ;;  %v308_v1 = vpop.eup %307 }
  0xa9   :  { %278 = vmatpush.msra.mxu3 %v306_v0  ;;  %v310_v3 = vpop.eup %309 }
  0xaa   :  { %187 = vmatpush.msra.mxu0 %v308_v1  ;;  %279 = vmatpush.msra.mxu2 %v308_v1 }
  0xab   :  { %280 = vmatpush.msra.mxu3 %v308_v1 }
  0xac   :  { %188 = vmatpush.msra.mxu0 %v310_v3  ;;  %281 = vmatpush.msra.mxu2 %v310_v3 }
  0xad   :  { %282 = vmatpush.msra.mxu3 %v310_v3  ;;  %270 = vmatmul.msk.f32.vlgmr.msra.gmra.mxu0 %vm160_vm0, %v132_v2 }
  0xae   :  { %271 = vmatmul.msk.f32.vlgmr.msra.gmra.mxu2 %vm160_vm0, %v133_v4  ;;  %272 = vmatmul.msk.f32.vlgmr.msra.gmra.mxu3 %vm160_vm0, %v134_v5 }
  0xb6   :  { %273 = vmatmul.msk.f32.gmra.mxu3 %vm160_vm0, %v135_v6 }
 0x12a   :  { %v190_v13 = vpop.f32.mrf.mxu0 }
 0x12b   :  { %v191_v16 = vadd.f32 %v190_v13, %v143_v15 }
 0x12d   :  { %v202_v20 = vsub.f32 0.0, %v191_v16 }
 0x12f   :  { %v206_v25 = vmul.f32 1.442695, %v202_v20 }
 0x131   :  { %v193_v9 = vpop.f32.mrf.mxu2  ;;  %v196_v10 = vpop.f32.mrf.mxu3 }
 0x132   :  { %v197_v12 = vadd.f32 %v196_v10, %v153_v8  ;;  %v194_v14 = vadd.f32 %v193_v9, %v148_v11 }
 0x134   :  { %v204_v17 = vsub.f32 0.0, %v197_v12  ;;  %v203_v18 = vsub.f32 0.0, %v194_v14 }
 0x136   :  { %v210_v21 = vmul.f32 1.442695, %v204_v17  ;;  %v208_v23 = vmul.f32 1.442695, %v203_v18 }
 0x138   :  { %311 = vpow2.f32 %v210_v21 }
 0x139   :  { %v199_v19 = vpop.f32.mrf.mxu3  ;;  %313 = vpow2.f32 %v208_v23 }
 0x13a   :  { %v200_v22 = vadd.f32 %v199_v19, %v158_v7 }
 0x13c   :  { %v205_v24 = vsub.f32 0.0, %v200_v22 }
 0x13e   :  { %v212_v26 = vmul.f32 1.442695, %v205_v24  ;;  %v312_v27 = vpop.eup %311 }
 0x13f   :  { %v314_v28 = vpop.eup %313  ;;  %v216_v30 = vadd.f32 1.0, %v312_v27 }
 0x140   :  { %315 = vpow2.f32 %v212_v26  ;;  %v215_v33 = vadd.f32 1.0, %v314_v28 }
 0x141   :  { %317 = vpow2.f32 %v206_v25 }
 0x146   :  { %v316_v29 = vpop.eup %315 }
 0x147   :  { %v217_v31 = vadd.f32 1.0, %v316_v29  ;;  %v318_v32 = vpop.eup %317 }
 0x148   :  { %v214_v34 = vadd.f32 1.0, %v318_v32 }
 0x149   :  { %319 = vrcp.f32 %v217_v31 }
 0x14a   :  { %321 = vrcp.f32 %v216_v30 }
 0x14b   :  { %323 = vrcp.f32 %v215_v33 }
 0x14c   :  { %325 = vrcp.f32 %v214_v34 }
 0x14f   :  { %v320_v35 = vpop.eup %319 }
 0x150   :  { %245 = vmatpush.msra.mxu1 %v320_v35  ;;  %v322_v36 = vpop.eup %321 }
 0x151   :  { %v324_v37 = vpop.eup %323 }
 0x152   :  { %246 = vmatpush.msra.mxu1 %v322_v36  ;;  %v326_v39 = vpop.eup %325 }
 0x154   :  { %247 = vmatpush.msra.mxu1 %v324_v37 }
 0x156   :  { %248 = vmatpush.msra.mxu1 %v326_v39 }
 0x157   :  { %274 = vmatmul.msk.f32.vlgmr.msra.gmra.mxu1 %vm160_vm0, %v222_v38 }
 0x1d4   :  { %v250_v42 = vpop.f32.mrf.mxu1 }
 0x1d5   :  { %v251_v43 = vadd.f32 %v250_v42, %v229_v41 }
 0x1d7   :  { %253 = vst [vmem:[#allocation3] sm:$0x1] %v251_v43 }
 0x1d8   :  { %264 = dma.vmem_to_hbm [thread:$0]  %s260_s10, 16, %s262_s13, [#allocation4]  }
 0x1d9   :  { %351 = dma.done.wait [#allocation4], 16  }
 0x1da   :  { %352 = vsyncadd [#allocation4], 4294967280 }
 0x1db   :  { %269 = vsyncpa [#allocation4], 1 }

</bundles_post_ra>
